<compile_context>
chip_gen: v6e
topology: v6e:2x2x1
jax: 0.10.0
libtpu: 0.0.40
codegen_flags: <defaults>
</compile_context>

<pallas_src>
import functools

import jax
import jax.numpy as jnp
from jax import lax
from jax.experimental import pallas as pl
from jax.experimental.pallas import tpu as pltpu


def _round_up(n, m):
    return ((n + m - 1) // m) * m


def _lowbias32(h):
    """32-bit integer hash (Chris Wellons' lowbias32). Pure jnp uint32 ops, so it
    lowers on the TPU VPU and runs identically in interpret mode / on host."""
    h = h ^ (h >> 16)
    h = h * jnp.uint32(0x7FEB352D)
    h = h ^ (h >> 15)
    h = h * jnp.uint32(0x846CA68B)
    h = h ^ (h >> 16)
    return h


def _dropout_keep_mask(flat_idx_i32, seed_i32, dropout_rate):
    """Inverted-dropout keep mask, determined only by (flat element index, seed):
    the realized mask is independent of the row tiling / chip generation.
    (flat index wraps mod 2^32 for huge tensors; fine for a dropout hash.)"""
    h = (flat_idx_i32.astype(jnp.uint32)
         + seed_i32.astype(jnp.uint32) * jnp.uint32(0x9E3779B9))
    bits = _lowbias32(h)
    thresh = jnp.uint32(min(int(float(dropout_rate) * 4294967296.0), 4294967295))
    # drop iff u < rate, compared in the integer domain (no f32 convert / scale).
    return bits >= thresh


def _add_norm_kernel(seed_ref, x_ref, y_ref, g_ref, b_ref, o_ref, *,
                     eps, dropout_rate, apply_dropout):
    f32 = jnp.float32
    x = x_ref[...].astype(f32)
    y = y_ref[...].astype(f32)
    tm_blk, d = x_ref.shape

    if apply_dropout:
        # Counter-based dropout on Y (training mode only). Mask depends only on
        # the global flat index + seed, so it is reproducible across tilings.
        row = lax.broadcasted_iota(jnp.int32, (tm_blk, d), 0)
        col = lax.broadcasted_iota(jnp.int32, (tm_blk, d), 1)
        flat_idx = (pl.program_id(0) * tm_blk + row) * d + col
        keep = _dropout_keep_mask(flat_idx, seed_ref[0], dropout_rate)
        scale = 0.0 if dropout_rate >= 1.0 else 1.0 / (1.0 - dropout_rate)
        y = jnp.where(keep, y * f32(scale), f32(0.0))

    s = x + y

    # Two-pass LayerNorm over the true feature width (block last dim == d, so no
    # column masking is needed; Mosaic handles any internal lane padding).
    inv_n = f32(1.0 / d)
    mean = jnp.sum(s, axis=-1, keepdims=True) * inv_n
    centered = s - mean
    var = jnp.sum(centered * centered, axis=-1, keepdims=True) * inv_n
    inv_std = lax.rsqrt(var + f32(eps))          # EUP rsqrt (free slot)

    out = centered * inv_std * g_ref[...].astype(f32) + b_ref[...].astype(f32)
    o_ref[...] = out.astype(o_ref.dtype)


def _choose_tm(m, d, itemsize):
    """Row-tile size from a VMEM budget: 3 arrays (X, Y, out) x 2 pipeline
    buffers per step, targeting ~24 MiB so it also fits v7x's 64 MiB VMEM."""
    budget = 24 * 1024 * 1024
    bytes_per_row = 6 * d * itemsize
    tm = max(8, min(1024, budget // max(bytes_per_row, 1)))
    tm = (tm // 8) * 8
    tm = min(tm, _round_up(m, 8))
    if m > 8:
        # Keep >= 2 grid steps so the "parallel" row axis can shard across
        # v7x's two TensorCores (no effect on single-TC v5e/v6e).
        tm = min(tm, _round_up(-(-m // 2), 8))
    return max(tm, 8)


def add_norm(x, y, gamma, beta, *, eps=1e-5, dropout_rate=0.0,
             training=False, seed=0):
    """AddNorm forward: LayerNorm(dropout(Y) + X) over the last dim."""
    assert x.shape == y.shape
    orig_shape = x.shape
    d = orig_shape[-1]

    x2 = x.reshape(-1, d)
    y2 = y.reshape(-1, d)
    m = x2.shape[0]
    itemsize = jnp.dtype(x.dtype).itemsize

    tm = _choose_tm(m, d, itemsize)
    grid = (pl.cdiv(m, tm),)          # ragged last block: OOB writes are dropped

    g2 = gamma.reshape(1, d)
    b2 = beta.reshape(1, d)
    seed_arr = jnp.asarray([seed], dtype=jnp.int32)
    apply_dropout = bool(training) and float(dropout_rate) > 0.0

    kernel = functools.partial(
        _add_norm_kernel, eps=float(eps),
        dropout_rate=float(dropout_rate), apply_dropout=apply_dropout)

    cost = pl.CostEstimate(
        flops=10 * m * d,
        transcendentals=m,
        bytes_accessed=(3 * m * d + 2 * d) * itemsize)

    # Explicit VMEM limit: double-buffered tiles + gamma/beta + headroom,
    # floored at 16 MiB and capped well inside v7x's 64 MiB.
    tile_bytes = 6 * tm * d * itemsize + 4 * d * itemsize
    vmem_limit = int(min(48 * 1024 * 1024,
                         max(16 * 1024 * 1024, tile_bytes + 8 * 1024 * 1024)))

    out = pl.pallas_call(
        kernel,
        out_shape=jax.ShapeDtypeStruct((m, d), x.dtype),
        grid_spec=pltpu.PrefetchScalarGridSpec(
            num_scalar_prefetch=0,
            grid=grid,
            in_specs=[
                pl.BlockSpec(memory_space=pltpu.MemorySpace.SMEM),  # dropout seed
                pl.BlockSpec((tm, d), lambda i: (i, 0)),            # X row tile
                pl.BlockSpec((tm, d), lambda i: (i, 0)),            # Y row tile
                pl.BlockSpec((1, d), lambda i: (0, 0)),             # gamma
                pl.BlockSpec((1, d), lambda i: (0, 0)),             # beta
            ],
            out_specs=pl.BlockSpec((tm, d), lambda i: (i, 0)),
        ),
        compiler_params=pltpu.CompilerParams(
            dimension_semantics=("parallel",),
            vmem_limit_bytes=vmem_limit),
        cost_estimate=cost,
    )(seed_arr, x2, y2, g2, b2)

    return out.reshape(orig_shape)


def _layer_norm_ref(s, gamma, beta, eps):
    mean = s.mean(axis=-1, keepdims=True)
    var = jnp.mean((s - mean) ** 2, axis=-1, keepdims=True)
    return (s - mean) / jnp.sqrt(var + eps) * gamma + beta


if __name__ == "__main__":
    # Module config: AddNorm(normalized_shape=32, dropout=0.1); inputs (batch, seq, hidden).
    batch, seq, hidden = 2, 8, 32
    eps = 1e-5

    key = jax.random.PRNGKey(0)
    kx, ky, kg, kb = jax.random.split(key, 4)
    x = jax.random.normal(kx, (batch, seq, hidden), dtype=jnp.float32)
    y = jax.random.normal(ky, (batch, seq, hidden), dtype=jnp.float32)
    gamma = 1.0 + 0.1 * jax.random.normal(kg, (hidden,), dtype=jnp.float32)
    beta = 0.1 * jax.random.normal(kb, (hidden,), dtype=jnp.float32)

    # Eval-mode forward (dropout = identity): check against pure-JAX LayerNorm(X + Y).
    out = jax.block_until_ready(
        add_norm(x, y, gamma, beta, eps=eps, dropout_rate=0.1, training=False))
    ref = _layer_norm_ref(x + y, gamma, beta, eps)
    assert out.shape == (batch, seq, hidden)
    assert jnp.allclose(out, ref, atol=1e-4, rtol=1e-4), \
        float(jnp.max(jnp.abs(out - ref)))

    # Training-mode forward: in-kernel hash-based inverted dropout on Y.
    # The mask is tiling-invariant, so it can be replicated on host exactly.
    rate, seed = 0.5, 123
    out_tr = jax.block_until_ready(
        add_norm(x, y, gamma, beta, eps=eps, dropout_rate=rate,
                 training=True, seed=seed))
    m = batch * seq
    rows = jnp.arange(m, dtype=jnp.int32)[:, None]
    cols = jnp.arange(hidden, dtype=jnp.int32)[None, :]
    keep = _dropout_keep_mask(rows * hidden + cols, jnp.int32(seed), rate)
    y_drop = jnp.where(keep, y.reshape(m, hidden) / (1.0 - rate), 0.0).reshape(y.shape)
    ref_tr = _layer_norm_ref(x + y_drop, gamma, beta, eps)
    assert out_tr.shape == (batch, seq, hidden)
    assert bool(jnp.all(jnp.isfinite(out_tr)))
    assert jnp.allclose(out_tr, ref_tr, atol=1e-4, rtol=1e-4), \
        float(jnp.max(jnp.abs(out_tr - ref_tr)))

    print("KERNEL_OK")
</pallas_src>

<mosaic_0001>
module attributes {stable_mosaic.version = 11 : i64} {
  func.func @_add_norm_kernel(%arg0: i32, %arg1: memref<1xi32, #tpu.memory_space<smem>>, %arg2: memref<8x32xf32, #tpu.memory_space<vmem>>, %arg3: memref<8x32xf32, #tpu.memory_space<vmem>>, %arg4: memref<1x32xf32, #tpu.memory_space<vmem>>, %arg5: memref<1x32xf32, #tpu.memory_space<vmem>>, %arg6: memref<8x32xf32, #tpu.memory_space<vmem>>) attributes {dimension_semantics = [#tpu.dimension_semantics<parallel>], iteration_bounds = array<i64: 2>, scalar_prefetch = 0 : i64, scratch_operands = 0 : i64, tpu.core_type = #tpu.core_type<tc>, window_params = [{transform_indices = @transform_0, window_bounds = array<i64: 1>}, {transform_indices = @transform_1, window_bounds = array<i64: 8, 32>}, {transform_indices = @transform_2, window_bounds = array<i64: 8, 32>}, {pipeline_mode = #tpu.pipeline_mode<synchronous>, transform_indices = @transform_3, window_bounds = array<i64: 1, 32>}, {pipeline_mode = #tpu.pipeline_mode<synchronous>, transform_indices = @transform_4, window_bounds = array<i64: 1, 32>}, {transform_indices = @transform_5, window_bounds = array<i64: 8, 32>}]} {
    %c0 = arith.constant 0 : index
    %c0_0 = arith.constant 0 : index
    %0 = vector.load %arg2[%c0, %c0_0] : memref<8x32xf32, #tpu.memory_space<vmem>>, vector<8x32xf32>
    %c0_1 = arith.constant 0 : index
    %c0_2 = arith.constant 0 : index
    %1 = vector.load %arg3[%c0_1, %c0_2] : memref<8x32xf32, #tpu.memory_space<vmem>>, vector<8x32xf32>
    %2 = arith.addf %0, %1 : vector<8x32xf32>
    %cst = arith.constant dense<0.000000e+00> : vector<8xf32>
    %3 = vector.multi_reduction <add>, %2, %cst [1] : vector<8x32xf32> to vector<8xf32>
    %4 = vector.shape_cast %3 : vector<8xf32> to vector<8x1xf32>
    %cst_3 = arith.constant 3.125000e-02 : f32
    %5 = vector.broadcast %cst_3 : f32 to vector<8x1xf32>
    %6 = arith.mulf %4, %5 : vector<8x1xf32>
    %7 = vector.broadcast %6 : vector<8x1xf32> to vector<8x32xf32>
    %8 = arith.subf %2, %7 : vector<8x32xf32>
    %9 = arith.mulf %8, %8 : vector<8x32xf32>
    %cst_4 = arith.constant dense<0.000000e+00> : vector<8xf32>
    %10 = vector.multi_reduction <add>, %9, %cst_4 [1] : vector<8x32xf32> to vector<8xf32>
    %11 = vector.shape_cast %10 : vector<8xf32> to vector<8x1xf32>
    %cst_5 = arith.constant 3.125000e-02 : f32
    %12 = vector.broadcast %cst_5 : f32 to vector<8x1xf32>
    %13 = arith.mulf %11, %12 : vector<8x1xf32>
    %cst_6 = arith.constant 9.99999974E-6 : f32
    %14 = vector.broadcast %cst_6 : f32 to vector<8x1xf32>
    %15 = arith.addf %13, %14 : vector<8x1xf32>
    %16 = math.rsqrt %15 : vector<8x1xf32>
    %17 = vector.broadcast %16 : vector<8x1xf32> to vector<8x32xf32>
    %18 = arith.mulf %8, %17 : vector<8x32xf32>
    %c0_7 = arith.constant 0 : index
    %c0_8 = arith.constant 0 : index
    %19 = vector.load %arg4[%c0_7, %c0_8] : memref<1x32xf32, #tpu.memory_space<vmem>>, vector<1x32xf32>
    %20 = vector.broadcast %19 : vector<1x32xf32> to vector<8x32xf32>
    %21 = arith.mulf %18, %20 : vector<8x32xf32>
    %c0_9 = arith.constant 0 : index
    %c0_10 = arith.constant 0 : index
    %22 = vector.load %arg5[%c0_9, %c0_10] : memref<1x32xf32, #tpu.memory_space<vmem>>, vector<1x32xf32>
    %23 = vector.broadcast %22 : vector<1x32xf32> to vector<8x32xf32>
    %24 = arith.addf %21, %23 : vector<8x32xf32>
    %c0_11 = arith.constant 0 : index
    %c0_12 = arith.constant 0 : index
    %25 = vector.load %arg6[%c0_11, %c0_12] : memref<8x32xf32, #tpu.memory_space<vmem>>, vector<8x32xf32>
    tpu.vector_store %arg6[%c0_11, %c0_12], %24 {strides = array<i32>} : memref<8x32xf32, #tpu.memory_space<vmem>>, vector<8x32xf32>,
    return
  }
  func.func @transform_0(%arg0: i32) -> i32 {
    %c0_i32 = arith.constant 0 : i32
    %c0_i32_0 = arith.constant 0 : i32
    return %c0_i32 : i32
  }
  func.func @transform_1(%arg0: i32) -> (i32, i32) {
    %c0_i32 = arith.constant 0 : i32
    %c0_i32_0 = arith.constant 0 : i32
    return %arg0, %c0_i32 : i32, i32
  }
  func.func @transform_2(%arg0: i32) -> (i32, i32) {
    %c0_i32 = arith.constant 0 : i32
    %c0_i32_0 = arith.constant 0 : i32
    return %arg0, %c0_i32 : i32, i32
  }
  func.func @transform_3(%arg0: i32) -> (i32, i32) {
    %c0_i32 = arith.constant 0 : i32
    %c0_i32_0 = arith.constant 0 : i32
    %c0_i32_1 = arith.constant 0 : i32
    return %c0_i32, %c0_i32_0 : i32, i32
  }
  func.func @transform_4(%arg0: i32) -> (i32, i32) {
    %c0_i32 = arith.constant 0 : i32
    %c0_i32_0 = arith.constant 0 : i32
    %c0_i32_1 = arith.constant 0 : i32
    return %c0_i32, %c0_i32_0 : i32, i32
  }
  func.func @transform_5(%arg0: i32) -> (i32, i32) {
    %c0_i32 = arith.constant 0 : i32
    %c0_i32_0 = arith.constant 0 : i32
    return %arg0, %c0_i32 : i32, i32
  }
}

</mosaic_0001>

<bundles_post_ra>
// kernel: tpu_custom_call.1
= control target key start
LH: loop header
LB: loop body
LE: loop exit
PB: predicated region body
PF: predicated region fallthrough
CT: control target
= control target key end

     0   :  { %11 = vsyncpa [#allocation4], 0  ;;  %s856_s0 = inlined_call_operand.<no memory space> [shape: s32[1], index: 0, kind: input, shape index: {}]   ;;  %s857_s1 = inlined_call_operand.hbm [shape: f32[16,32], index: 1, kind: input, shape index: {}]   ;;  %s858_s2 = inlined_call_operand.hbm [shape: f32[16,32], index: 2, kind: input, shape index: {}]   ;;  %s859_s3 = inlined_call_operand.vmem [shape: f32[1,32], index: 3, kind: input, shape index: {}]   ;;  %s860_s4 = inlined_call_operand.vmem [shape: f32[1,32], index: 4, kind: input, shape index: {}]   ;;  %s861_s5 = inlined_call_operand.hbm [shape: f32[16,32], index: 5, kind: output, shape index: {}]  }
   0x1   :  { %13 = vsyncpa [#allocation4 + $0x1], 0 }
   0x2   :  { %14 = vsyncpa [#allocation7], 0 }
   0x3   :  { %16 = vsyncpa [#allocation7 + $0x1], 0 }
   0x4   :  { %17 = vsyncpa [#allocation5], 0 }
   0x5   :  { %19 = vsyncpa [#allocation5 + $0x1], 0  ;;  %s648_s0 = smov 0   ;;  %s650_s18 = smov 0  }
   0x6   :  { %s652_s19 = smov 0   ;;  %s654_s20 = smov 0  }
   0x7 LB: > { %s669_s21 = sadd.s32 4294967295, %s613_s20   ;;  %s419_s22 = sadd.s32 4294967294, %s613_s20   ;;  %s613_s20 = sphi %s654_s20, %s880_s20   ;;  %s609_s19 = sphi %s652_s19, %s879_s19   ;;  %s605_s18 = sphi %s650_s18, %s878_s18   ;;  %s601_s0 = sphi %s648_s0, %s877_s0  }
   0x8   : > { %s673_s23 = sadd.s32 1, %s613_s20   ;;  %s53_s24 = sadd.s32 1, %s609_s19 }
   0x9   : > { %s50_s25 = ssub.s32 %s613_s20, %s673_s23  ;;  %p60_p0 = scmp.ne.s32.totalorder %s609_s19, %s605_s18 }
   0xa   : > { %p51_p1 = scmp.eq.s32.totalorder %s50_s25, 0  ;;  %p61_p2 = scmp.eq.s32.totalorder %s613_s20, 0 }
   0xb   : > { %p66_p3 = scmp.ne.s32.totalorder %s605_s18, %s601_s0  ;;  %p67_p4 = scmp.eq.s32.totalorder %s669_s21, 0 }
   0xc   : > { %s685_s26 = scalar_select %p51_p1, %s609_s19, %s53_s24  }
   0xd   : > { %p687_p5 = por %p61_p2, %p60_p0  ;;  %p691_p6 = por %p67_p4, %p66_p3 }
   0xe   : > { %p158_p7 = scmp.eq.s32.totalorder %s669_s21, 1  ;;  %p164_p8 = scmp.eq.s32.totalorder %s419_s22, 1 }
   0xf   : > { %s865_s28 = scalar_select %p691_p6, 1, 0 }
  0x10   : > { %p453_p10 = scmp.lt.s32.totalorder %s613_s20, 2  ;;  %p698_p11 = por %p158_p7, %p60_p0 }
  0x11   : > { %p702_p12 = por %p164_p8, %p66_p3  ;;  %s707_s6 = sand.u32 1, %s609_s19  }
  0x12   : > { %s866_s29 = scalar_select %p698_p11, 1, 0 }
  0x13   : > { %s867_s30 = scalar_select %p702_p12, 1, 0 }
  0x14   : > { %s423_s7 = sshll.u32 %s613_s20, 7  ;;  %s422_s8 = sshll.u32 %s707_s6, 3 }
  0x15   : > { %s716_s11 = scalar_lea.hbm %s857_s1, %s423_s7  ;;  %s197_s12 = scalar_lea.vmem [#allocation3], %s422_s8 }
  0x16   : > { %s204_s13 = sshll.u32 %s197_s12, 4  ;;  %p722_p13 = pnand %p453_p10, %p687_p5  ;;  %s726_s13 = int_to_ptr.vmem [resolvable:$true] %s204_s13 }
  0x17   : > { %s194_s15 = scalar_lea.sflag [#allocation4], %s707_s6  ;;  %s489_s16 = scalar_lea.hbm %s716_s11, 128 }
  0x18   : > { %p490_p2 = scmp.ne.s32.totalorder %s716_s11, %s489_s16  ;;  %p491_p3 = pneg %p722_p13 }
  0x19   : > { %s494_s24 = scalar_lea.hbm %s857_s1, 256  ;;  %p495_p5 = scmp.lt.s32.totalorder %s716_s11, %s857_s1 }
  0x1a   : > { %p492_p4 = pnand %p491_p3, %p490_p2  ;;  %p496_p8 = scmp.lt.s32.totalorder %s494_s24, %s489_s16 }
  0x1c   : > { %p493_p7 = pneg %p492_p4  ;;  %p497_p10 = por %p496_p8, %p495_p5 }
  0x1e   : > { %p498_p9 = pnand %p497_p10, %p493_p7 }
  0x20   : > { %501 = shalt.err (!%p498_p9)
}
  0x21   : > { %s502_s9 = scalar_lea.vmem %s726_s13, 128  ;;  %s615_s10 = smov [#allocation3]  }
  0x22   : > { %p503_p0 = scmp.ne.s32.totalorder %s726_s13, %s502_s9  ;;  %s507_s12 = sshll.u32 %s615_s10, 4  ;;  %s508_s12 = int_to_ptr.vmem [resolvable:$false] %s507_s12 }
  0x23   : > { %s509_s17 = scalar_lea.vmem %s508_s12, 256  ;;  %p510_p1 = scmp.lt.s32.totalorder %s726_s13, %s508_s12 }
  0x24   : > { %p505_p2 = pnand %p503_p0, %p491_p3  ;;  %p511_p12 = scmp.lt.s32.totalorder %s509_s17, %s502_s9 }
  0x26   : > { %p506_p4 = pneg %p505_p2  ;;  %p512_p11 = por %p511_p12, %p510_p1 }
  0x28   : > { %p513_p5 = pnand %p512_p11, %p506_p4 }
  0x2a   : > { %516 = shalt.err (!%p513_p5)
}
  0x2b   : > { %445 = dma.hbm_to_vmem [thread:$0]  (!%p722_p13), %s716_s11, 128, %s726_s13, %s194_s15  }
  0x2c   : > { %p869_p9 = scmp.lt.s32.totalorder %s613_s20, 3  ;;  %p870_p0 = scmp.ge.s32.totalorder %s613_s20, 1 }
  0x2d   : > { %s768_s25 = scalar_lea.hbm %s858_s2, %s423_s7  ;;  %s215_s27 = scalar_lea.vmem [#allocation6], %s422_s8 }
  0x2e   : > { %p759_p7 = pnand %p870_p0, %p869_p9  ;;  %s222_s9 = sshll.u32 %s215_s27, 4  ;;  %s223_s9 = int_to_ptr.vmem [resolvable:$true] %s222_s9 }
  0x2f   : > { %s212_s11 = scalar_lea.sflag [#allocation7], %s707_s6  ;;  %s517_s13 = scalar_lea.hbm %s768_s25, 128 }
  0x30   : > { %s871_s16 = scalar_select %p759_p7, 1, 0 }
  0x31   : > { %p518_p11 = scmp.ne.s32.totalorder %s768_s25, %s517_s13  ;;  %s522_s12 = scalar_lea.hbm %s858_s2, 256 }
  0x32   : > { %p523_p8 = scmp.lt.s32.totalorder %s768_s25, %s858_s2  ;;  %p524_p10 = scmp.lt.s32.totalorder %s522_s12, %s517_s13 }
  0x33   : > { %p520_p12 = pnand %p518_p11, %p491_p3 }
  0x34   : > { %p525_p2 = por %p524_p10, %p523_p8 }
  0x35   : > { %p521_p1 = pneg %p520_p12 }
  0x37   : > { %p526_p4 = pnand %p525_p2, %p521_p1 }
  0x39   : > { %529 = shalt.err (!%p526_p4)
}
  0x3a   : > { %s530_s8 = scalar_lea.vmem %s223_s9, 128  ;;  %s616_s6 = smov [#allocation6]  }
  0x3b   : > { %p531_p5 = scmp.ne.s32.totalorder %s223_s9, %s530_s8  ;;  %s535_s22 = sshll.u32 %s616_s6, 4  ;;  %s536_s22 = int_to_ptr.vmem [resolvable:$false] %s535_s22 }
  0x3c   : > { %s537_s24 = scalar_lea.vmem %s536_s22, 256  ;;  %p538_p11 = scmp.lt.s32.totalorder %s223_s9, %s536_s22 }
  0x3d   : > { %p533_p9 = pnand %p531_p5, %p491_p3  ;;  %p539_p12 = scmp.lt.s32.totalorder %s537_s24, %s530_s8 }
  0x3f   : > { %p534_p0 = pneg %p533_p9  ;;  %p540_p6 = por %p539_p12, %p538_p11 }
  0x41   : > { %p541_p7 = pnand %p540_p6, %p534_p0 }
  0x43   : > { %544 = shalt.err (!%p541_p7)
}
  0x44   : > { %448 = dma.hbm_to_vmem [thread:$0]  (!%p722_p13), %s768_s25, 128, %s223_s9, %s212_s11  }
  0x45   : > { %p872_p1 = scmp.ne.s32.totalorder %s871_s16, 0 }
  0x46   : > { %s794_s27 = sand.u32 (!%p872_p1), 1, %s605_s18   ;;  %p873_p6 = scmp.ne.s32.totalorder (!%p872_p1), %s865_s28, 0 }
  0x47   : > { %231 = sbr.rel (%p872_p1) target bundleno = 403 (0x193), region = 40  ;;  %s797_s13 = sshll.u32 (!%p872_p1), %s794_s27, 3 }
  0x48   : > { %s234_s15 = scalar_lea.sflag (!%p872_p1), [#allocation4], %s794_s27  ;;  %s237_s10 = scalar_lea.vmem (!%p872_p1), [#allocation3], %s797_s13 }
  0x4c   : > { %588 = dma.done.wait (%p873_p6), %s234_s15, 128  }
  0x4d   : > { %590 = vsyncadd (%p873_p6), %s234_s15, 4294967168  ;;  %s243_s14 = scalar_lea.sflag [#allocation7], %s794_s27  ;;  %s246_s16 = scalar_lea.vmem [#allocation6], %s797_s13 }
  0x4e   : > { %592 = dma.done.wait (%p873_p6), %s243_s14, 128  }
  0x4f   : > { %594 = vsyncadd (%p873_p6), %s243_s14, 4294967168  ;;  %v278_v0 = vld [vmem:[%s237_s10] sm:$0xff]  ;;  %v279_v1 = vld [vmem:[%s246_s16] sm:$0xff]  ;;  %vm281_vm0 = vcmask 261120   ;;  %s433_s12 = sshll.u32 %s669_s21, 7  ;;  %s277_s7 = scalar_lea.vmem [#allocation8], %s797_s13 }
  0x50   : > { %v280_v2 = vadd.f32 %v279_v1, %v278_v0  ;;  %v430_v13 = vld [vmem:[%s859_s3] ss:$0 sm:$0xff]  ;;  %s326_s17 = sshll.u32 %s277_s7, 4  ;;  %s324_s22 = scalar_lea.hbm %s861_s5, %s433_s12  ;;  %s327_s17 = int_to_ptr.vmem [resolvable:$true] %s326_s17 }
  0x51   : > { %v431_v15 = vld [vmem:[%s860_s4] ss:$0 sm:$0xff]  ;;  %s313_s24 = scalar_lea.sflag [#allocation5], %s794_s27  ;;  %s545_s15 = scalar_lea.vmem %s327_s17, 128 }
  0x52   : > { %v282_v3 = vsel %vm281_vm0, %v280_v2, 0.0  ;;  %p546_p13 = scmp.ne.s32.totalorder %s327_s17, %s545_s15  ;;  %p874_p3 = scmp.ne.s32.totalorder %s866_s29, 0 }
  0x53   : > { %283 = vadd.xlane.f32.xlu0 %v282_v3  ;;  %s617_s10 = smov [#allocation8]  }
  0x54   : > { %p547_p7 = pnand %p546_p13, %p874_p3  ;;  %s549_s14 = sshll.u32 %s617_s10, 4  ;;  %s550_s14 = int_to_ptr.vmem [resolvable:$false] %s549_s14 }
  0x55   : > { %s551_s21 = scalar_lea.vmem %s550_s14, 256  ;;  %p552_p10 = scmp.lt.s32.totalorder %s327_s17, %s550_s14 }
  0x56   : > { %p548_p8 = pneg %p547_p7  ;;  %p553_p2 = scmp.lt.s32.totalorder %s551_s21, %s545_s15 }
  0x58   : > { %p554_p4 = por %p553_p2, %p552_p10 }
  0x5a   : > { %p555_p5 = pnand %p554_p4, %p548_p8 }
  0xdc   : > { %v284_v4 = vpop.xlane.xlu0 %283 }
  0xdd   : > { %v285_v5 = vmul.f32 0.03125, %v284_v4 }
  0xdf   : > { %v286_v6 = vsub.f32 %v280_v2, %v285_v5 }
  0xe1   : > { %v287_v7 = vmul.f32 %v286_v6, %v286_v6 }
  0xe3   : > { %v288_v8 = vsel %vm281_vm0, %v287_v7, 0.0 }
  0xe4   : > { %289 = vadd.xlane.f32.xlu0 %v288_v8 }
 0x16d   : > { %v290_v9 = vpop.xlane.xlu0 %289 }
 0x16e   : > { %v291_v10 = vmul.f32 0.03125, %v290_v9 }
 0x170   : > { %v292_v11 = vadd.f32 1e-05, %v291_v10 }
 0x172   : > { %487 = vrsqrt.f32 %v292_v11 }
 0x17f   : > { %v488_v12 = vpop.eup %487 }
 0x180   : > { %v294_v14 = vmul.f32 %v488_v12, %v286_v6 }
 0x182   : > { %v302_v16 = vmul.f32 %v430_v13, %v294_v14 }
 0x184   : > { %v310_v17 = vadd.f32 %v431_v15, %v302_v16 }
 0x186   : > { %311 = vst.msk [vmem:[%s277_s7] sm:$0xff] %vm281_vm0, %v310_v17 }
 0x187   : > { %558 = shalt.err (!%p555_p5)
}
 0x188   : > { %s559_s13 = scalar_lea.hbm %s324_s22, 128  ;;  %s563_s28 = scalar_lea.hbm %s861_s5, 256 }
 0x189   : > { %p560_p9 = scmp.ne.s32.totalorder %s324_s22, %s559_s13  ;;  %p564_p12 = scmp.lt.s32.totalorder %s324_s22, %s861_s5 }
 0x18a   : > { %p565_p1 = scmp.lt.s32.totalorder %s563_s28, %s559_s13 }
 0x18b   : > { %p561_p0 = pnand %p560_p9, %p874_p3 }
 0x18c   : > { %p566_p6 = por %p565_p1, %p564_p12 }
 0x18d   : > { %p562_p11 = pneg %p561_p0 }
 0x18f   : > { %p567_p13 = pnand %p566_p6, %p562_p11 }
 0x191   : > { %570 = shalt.err (!%p567_p13)
}
 0x192   : > { %440 = dma.vmem_to_hbm [thread:$0]  (%p874_p3), %s327_s17, 128, %s324_s22, %s313_s24  }
 0x193 PF: > { %s338_s11 = sand.u32 1, %s601_s0   ;;  %p875_p7 = scmp.ne.s32.totalorder %s867_s30, 0 }
 0x194   : > { %p876_p8 = scmp.ge.s32.totalorder %s613_s20, 2  ;;  %s339_s12 = scalar_lea.sflag [#allocation5], %s338_s11 }
 0x196   : > { %p450_p10 = pnand %p876_p8, %p875_p7 }
 0x198   : > { %p451_p2 = pneg %p450_p10 }
 0x19a   : > { %596 = dma.done.wait (%p451_p2), %s339_s12, 128  }
 0x19b   : > { %598 = vsyncadd (%p451_p2), %s339_s12, 4294967168  ;;  %p22_p4 = scmp.ge.s32.totalorder %s673_s23, 4   ;;  %s877_s0 = smov %s605_s18 }
 0x19c   : > { %s878_s18 = smov %s609_s19  ;;  %s879_s19 = smov %s685_s26 }
 0x19d   : > { %s880_s20 = smov %s673_s23  ;;  %24 = sbr.rel (!%p22_p4) target bundleno = 7 (0x7), region = 98 }
 0x1a2   :  { %344 = vsyncpa [#allocation4], 1 }
 0x1a3   :  { %346 = vsyncpa [#allocation4 + $0x1], 1 }
 0x1a4   :  { %347 = vsyncpa [#allocation7], 1 }
 0x1a5   :  { %349 = vsyncpa [#allocation7 + $0x1], 1 }
 0x1a6   :  { %350 = vsyncpa [#allocation5], 1 }
 0x1a7   :  { %352 = vsyncpa [#allocation5 + $0x1], 1 }

</bundles_post_ra>
